<compile_context>
chip_gen: v5e
topology: v5e:2x2
jax: 0.10.0
libtpu: 0.0.40
codegen_flags: <defaults>
</compile_context>

<pallas_src>
import functools
import math

import jax
import jax.numpy as jnp
from jax import lax
from jax.experimental import pallas as pl
from jax.experimental.pallas import tpu as pltpu


def mha_kernel(q_ref, k_ref, v_ref, wqkv_ref, wd_ref, bd_ref, out_ref, *,
               batch, seq_q, seq_k, num_heads, depth, d_model, mode):
    f32 = jnp.float32
    bf16 = jnp.bfloat16
    scale = 1.0 / math.sqrt(depth)

    wqkv = wqkv_ref[...]                                        # [Din, 3*Dm] f32

    if mode == "qkv":
        # Self-attention: one projection matmul with N = 3*Dm keeps the MXU
        # streaming instead of three separate fill/drain cycles.
        qkv = jnp.dot(q_ref[...], wqkv, preferred_element_type=f32)
        q = qkv[:, :d_model]
        k = qkv[:, d_model:2 * d_model]
        v = qkv[:, 2 * d_model:]
    elif mode == "kv":
        # key is value: fuse the K/V projections (N = 2*Dm).
        q = jnp.dot(q_ref[...], wqkv[:, :d_model], preferred_element_type=f32)
        kv = jnp.dot(k_ref[...], wqkv[:, d_model:], preferred_element_type=f32)
        k = kv[:, :d_model]
        v = kv[:, d_model:]
    else:
        q = jnp.dot(q_ref[...], wqkv[:, :d_model], preferred_element_type=f32)
        k = jnp.dot(k_ref[...], wqkv[:, d_model:2 * d_model],
                    preferred_element_type=f32)
        v = jnp.dot(v_ref[...], wqkv[:, 2 * d_model:],
                    preferred_element_type=f32)

    # Fold the 1/sqrt(depth) scale into q once (single VPU pass), then cast
    # the MXU operands to bf16.  Softmax math stays f32.
    q_bf = (q * scale).astype(bf16)                             # [B*Sq, Dm]
    k_bf = k.astype(bf16)                                       # [B*Sk, Dm]
    v_bf = v.astype(bf16)                                       # [B*Sk, Dm]
    wd = wd_ref[...]                                            # [Dm, Dm] f32
    bias = bd_ref[...]                                          # [1, Dm]  f32

    for b in range(batch):                                      # tiny, unrolled
        qb = q_bf[b * seq_q:(b + 1) * seq_q, :]
        kb = k_bf[b * seq_k:(b + 1) * seq_k, :]
        vb = v_bf[b * seq_k:(b + 1) * seq_k, :]

        acc = jnp.zeros((seq_q, d_model), dtype=f32)
        for h in range(num_heads):
            lo = h * depth
            hi = lo + depth
            qh = qb[:, lo:hi]                                   # [Sq, depth] bf16
            kh = kb[:, lo:hi]                                   # [Sk, depth] bf16
            vh = vb[:, lo:hi]                                   # [Sk, depth] bf16

            # Transpose-free logits: contract the depth axis of both operands.
            logits = lax.dot_general(
                qh, kh, (((1,), (1,)), ((), ())),
                preferred_element_type=f32)                     # [Sq, Sk] f32

            # Numerically-stable softmax; normalization deferred past the PV
            # matmul so the divide becomes an [Sq, depth] multiply and the
            # reciprocal rides the EUP slot.
            m = jnp.max(logits, axis=-1, keepdims=True)
            p = jnp.exp(logits - m)
            denom = jnp.sum(p, axis=-1, keepdims=True)

            o = jnp.dot(p.astype(bf16), vh, preferred_element_type=f32)
            o = o * pl.reciprocal(denom, approx=True)           # [Sq, depth] f32

            # Accumulate directly into the output projection: no concat of
            # 32-lane head outputs; Wd is sliced on its sublane dim (cheap).
            acc = acc + jnp.dot(o, wd[lo:hi, :], preferred_element_type=f32)

        out_ref[b * seq_q:(b + 1) * seq_q, :] = (acc + bias).astype(out_ref.dtype)


@functools.partial(jax.jit, static_argnames=("num_heads", "mode"))
def _mha_pallas(query, key, value, wqkv, wd, bd, *, num_heads, mode):
    B, Sq, Din = query.shape
    Sk = key.shape[1]
    Dm = wd.shape[0]
    assert Dm % num_heads == 0, "d_model must be divisible by num_heads"
    assert Dm % 128 == 0, "d_model must be a multiple of 128 for lane-dense stores"
    depth = Dm // num_heads

    Mq = B * Sq
    Mk = B * Sk

    # Flatten batch into the matmul M dimension outside the kernel (free).
    q2d = query.reshape(Mq, Din)
    k2d = key.reshape(Mk, Din)
    v2d = value.reshape(Mk, Din)
    bd2 = bd.reshape(1, Dm)

    kernel = functools.partial(
        mha_kernel, batch=B, seq_q=Sq, seq_k=Sk, num_heads=num_heads,
        depth=depth, d_model=Dm, mode=mode)

    out2d = pl.pallas_call(
        kernel,
        out_shape=jax.ShapeDtypeStruct((Mq, Dm), query.dtype),
        # Single grid step: at these sizes the whole problem fits in VMEM and
        # per-step overhead would dominate.  For large B/Sq, add a "parallel"
        # axis over (batch, Sq-tile) instead.
        grid=(1,),
        in_specs=[
            pl.BlockSpec((Mq, Din), lambda i: (0, 0)),
            pl.BlockSpec((Mk, Din), lambda i: (0, 0)),
            pl.BlockSpec((Mk, Din), lambda i: (0, 0)),
            pl.BlockSpec((Din, 3 * Dm), lambda i: (0, 0)),   # fused Wq|Wk|Wv
            pl.BlockSpec((Dm, Dm), lambda i: (0, 0)),
            pl.BlockSpec((1, Dm), lambda i: (0, 0)),
        ],
        out_specs=pl.BlockSpec((Mq, Dm), lambda i: (0, 0)),
        compiler_params=pltpu.CompilerParams(
            dimension_semantics=("arbitrary",),
            vmem_limit_bytes=32 * 1024 * 1024,
        ),
    )(q2d, k2d, v2d, wqkv, wd, bd2)

    return out2d.reshape(B, Sq, Dm)


def mha_forward(query, key, value, wq, wk, wv, wd, bd, *, num_heads):
    """Pallas MHA forward.  Weights are [in, out]; bd is [d_model]."""
    if query is key and key is value:
        mode = "qkv"        # self-attention: fused QKV projection
    elif key is value:
        mode = "kv"         # shared K/V input tensor: fused KV projection
    else:
        mode = "none"       # fully general: separate projections
    wqkv = jnp.concatenate([wq, wk, wv], axis=1)                # [Din, 3*Dm]
    return _mha_pallas(query, key, value, wqkv, wd, bd,
                       num_heads=num_heads, mode=mode)


def mha_reference(query, key, value, wq, wk, wv, wd, bd, num_heads):
    """Pure-JAX mirror of the PyTorch forward (unmasked path)."""
    B, Sq, _ = query.shape
    Dm = wq.shape[1]
    depth = Dm // num_heads

    def split_heads(x):
        b, s, _ = x.shape
        return x.reshape(b, s, num_heads, depth).transpose(0, 2, 1, 3)

    q = split_heads(query @ wq)
    k = split_heads(key @ wk)
    v = split_heads(value @ wv)

    logits = jnp.einsum("bhqd,bhkd->bhqk", q, k) / math.sqrt(depth)
    attn = jax.nn.softmax(logits, axis=-1)
    o = jnp.einsum("bhqk,bhkd->bhqd", attn, v)
    concat = o.transpose(0, 2, 1, 3).reshape(B, Sq, Dm)
    return concat @ wd + bd


if __name__ == "__main__":
    B = 2
    d_input, d_model, num_heads = 32, 128, 4   # depth=32; d_model % d_input == 0

    root = jax.random.PRNGKey(0)
    (k_self, k_q, k_kv, k_k3, k_v3,
     k_wq, k_wk, k_wv, k_wd, k_bd) = jax.random.split(root, 10)

    s_in = 1.0 / math.sqrt(d_input)
    s_dm = 1.0 / math.sqrt(d_model)
    wq = jax.random.normal(k_wq, (d_input, d_model), jnp.float32) * s_in
    wk = jax.random.normal(k_wk, (d_input, d_model), jnp.float32) * s_in
    wv = jax.random.normal(k_wv, (d_input, d_model), jnp.float32) * s_in
    wd = jax.random.normal(k_wd, (d_model, d_model), jnp.float32) * s_dm
    bd = jax.random.normal(k_bd, (d_model,), jnp.float32) * 0.01

    def check(name, out, ref):
        out = jax.block_until_ready(out)
        assert out.shape == ref.shape, (name, out.shape, ref.shape)
        max_err = float(jnp.max(jnp.abs(out - ref)))
        # bf16 MXU operands in the attention matmuls -> bf16-level tolerance.
        assert jnp.allclose(out, ref, atol=8e-2, rtol=8e-2), (
            f"{name}: max abs err {max_err}")

    # 1) Self-attention (query is key is value) -> fused QKV projection path.
    x = jax.random.normal(k_self, (B, 16, d_input), jnp.float32)
    out = mha_forward(x, x, x, wq, wk, wv, wd, bd, num_heads=num_heads)
    check("self", out, mha_reference(x, x, x, wq, wk, wv, wd, bd, num_heads))

    # 2) Cross-attention with a shared key/value tensor -> fused KV path.
    q_in = jax.random.normal(k_q, (B, 8, d_input), jnp.float32)
    kv_in = jax.random.normal(k_kv, (B, 16, d_input), jnp.float32)
    out = mha_forward(q_in, kv_in, kv_in, wq, wk, wv, wd, bd, num_heads=num_heads)
    check("cross", out,
          mha_reference(q_in, kv_in, kv_in, wq, wk, wv, wd, bd, num_heads))

    # 3) Fully distinct query/key/value -> separate projection path.
    k_in = jax.random.normal(k_k3, (B, 16, d_input), jnp.float32)
    v_in = jax.random.normal(k_v3, (B, 16, d_input), jnp.float32)
    out = mha_forward(q_in, k_in, v_in, wq, wk, wv, wd, bd, num_heads=num_heads)
    check("general", out,
          mha_reference(q_in, k_in, v_in, wq, wk, wv, wd, bd, num_heads))

    print("KERNEL_OK")
</pallas_src>

<mosaic_0001>
module attributes {stable_mosaic.version = 11 : i64} {
  func.func @mha_kernel(%arg0: i32, %arg1: memref<32x32xf32, #tpu.memory_space<vmem>>, %arg2: memref<32x32xf32, #tpu.memory_space<vmem>>, %arg3: memref<32x32xf32, #tpu.memory_space<vmem>>, %arg4: memref<32x384xf32, #tpu.memory_space<vmem>>, %arg5: memref<128x128xf32, #tpu.memory_space<vmem>>, %arg6: memref<1x128xf32, #tpu.memory_space<vmem>>, %arg7: memref<32x128xf32, #tpu.memory_space<vmem>>) attributes {dimension_semantics = [#tpu.dimension_semantics<arbitrary>], iteration_bounds = array<i64: 1>, scalar_prefetch = 0 : i64, scratch_operands = 0 : i64, tpu.core_type = #tpu.core_type<tc>, window_params = [{pipeline_mode = #tpu.pipeline_mode<synchronous>, transform_indices = @transform_0, window_bounds = array<i64: 32, 32>}, {pipeline_mode = #tpu.pipeline_mode<synchronous>, transform_indices = @transform_1, window_bounds = array<i64: 32, 32>}, {pipeline_mode = #tpu.pipeline_mode<synchronous>, transform_indices = @transform_2, window_bounds = array<i64: 32, 32>}, {pipeline_mode = #tpu.pipeline_mode<synchronous>, transform_indices = @transform_3, window_bounds = array<i64: 32, 384>}, {pipeline_mode = #tpu.pipeline_mode<synchronous>, transform_indices = @transform_4, window_bounds = array<i64: 128, 128>}, {pipeline_mode = #tpu.pipeline_mode<synchronous>, transform_indices = @transform_5, window_bounds = array<i64: 1, 128>}, {pipeline_mode = #tpu.pipeline_mode<synchronous>, transform_indices = @transform_6, window_bounds = array<i64: 32, 128>}]} {
    %c0 = arith.constant 0 : index
    %c0_0 = arith.constant 0 : index
    %0 = vector.load %arg4[%c0, %c0_0] : memref<32x384xf32, #tpu.memory_space<vmem>>, vector<32x384xf32>
    %c0_1 = arith.constant 0 : index
    %c0_2 = arith.constant 0 : index
    %1 = vector.load %arg1[%c0_1, %c0_2] : memref<32x32xf32, #tpu.memory_space<vmem>>, vector<32x32xf32>
    %cst = arith.constant dense<0.000000e+00> : vector<32x384xf32>
    %2 = tpu.matmul %1, %0, %cst {dimension_numbers = #tpu.dot_dimension_numbers<[1], [0], [0], [1], [0, 0, 1, 1], [], []>} : vector<32x32xf32>, vector<32x384xf32>, vector<32x384xf32> -> vector<32x384xf32>
    %3 = vector.extract_strided_slice %2 {offsets = [0, 0], sizes = [32, 128], strides = [1, 1]} : vector<32x384xf32> to vector<32x128xf32>
    %4 = vector.extract_strided_slice %2 {offsets = [0, 128], sizes = [32, 128], strides = [1, 1]} : vector<32x384xf32> to vector<32x128xf32>
    %5 = vector.extract_strided_slice %2 {offsets = [0, 256], sizes = [32, 128], strides = [1, 1]} : vector<32x384xf32> to vector<32x128xf32>
    %cst_3 = arith.constant 0.176776692 : f32
    %6 = vector.broadcast %cst_3 : f32 to vector<32x128xf32>
    %7 = arith.mulf %3, %6 : vector<32x128xf32>
    %8 = arith.truncf %7 : vector<32x128xf32> to vector<32x128xbf16>
    %9 = arith.truncf %4 : vector<32x128xf32> to vector<32x128xbf16>
    %10 = arith.truncf %5 : vector<32x128xf32> to vector<32x128xbf16>
    %c0_4 = arith.constant 0 : index
    %c0_5 = arith.constant 0 : index
    %11 = vector.load %arg5[%c0_4, %c0_5] : memref<128x128xf32, #tpu.memory_space<vmem>>, vector<128x128xf32>
    %c0_6 = arith.constant 0 : index
    %c0_7 = arith.constant 0 : index
    %12 = vector.load %arg6[%c0_6, %c0_7] : memref<1x128xf32, #tpu.memory_space<vmem>>, vector<1x128xf32>
    %13 = vector.extract_strided_slice %8 {offsets = [0, 0], sizes = [16, 128], strides = [1, 1]} : vector<32x128xbf16> to vector<16x128xbf16>
    %14 = vector.extract_strided_slice %9 {offsets = [0, 0], sizes = [16, 128], strides = [1, 1]} : vector<32x128xbf16> to vector<16x128xbf16>
    %15 = vector.extract_strided_slice %10 {offsets = [0, 0], sizes = [16, 128], strides = [1, 1]} : vector<32x128xbf16> to vector<16x128xbf16>
    %cst_8 = arith.constant 0.000000e+00 : f32
    %16 = vector.broadcast %cst_8 : f32 to vector<16x128xf32>
    %17 = vector.extract_strided_slice %13 {offsets = [0, 0], sizes = [16, 32], strides = [1, 1]} : vector<16x128xbf16> to vector<16x32xbf16>
    %18 = vector.extract_strided_slice %14 {offsets = [0, 0], sizes = [16, 32], strides = [1, 1]} : vector<16x128xbf16> to vector<16x32xbf16>
    %19 = vector.extract_strided_slice %15 {offsets = [0, 0], sizes = [16, 32], strides = [1, 1]} : vector<16x128xbf16> to vector<16x32xbf16>
    %cst_9 = arith.constant dense<0.000000e+00> : vector<16x16xf32>
    %20 = tpu.matmul %17, %18, %cst_9 {dimension_numbers = #tpu.dot_dimension_numbers<[1], [1], [0], [0], [0, 0, 1, 0], [], []>} : vector<16x32xbf16>, vector<16x32xbf16>, vector<16x16xf32> -> vector<16x16xf32>
    %cst_10 = arith.constant dense<0xFF800000> : vector<16xf32>
    %21 = vector.multi_reduction <maximumf>, %20, %cst_10 [1] : vector<16x16xf32> to vector<16xf32>
    %22 = vector.shape_cast %21 : vector<16xf32> to vector<16x1xf32>
    %23 = vector.broadcast %22 : vector<16x1xf32> to vector<16x16xf32>
    %24 = arith.subf %20, %23 : vector<16x16xf32>
    %25 = math.exp %24 : vector<16x16xf32>
    %cst_11 = arith.constant dense<0.000000e+00> : vector<16xf32>
    %26 = vector.multi_reduction <add>, %25, %cst_11 [1] : vector<16x16xf32> to vector<16xf32>
    %27 = vector.shape_cast %26 : vector<16xf32> to vector<16x1xf32>
    %28 = arith.truncf %25 : vector<16x16xf32> to vector<16x16xbf16>
    %cst_12 = arith.constant dense<0.000000e+00> : vector<16x32xf32>
    %29 = tpu.matmul %28, %19, %cst_12 {dimension_numbers = #tpu.dot_dimension_numbers<[1], [0], [0], [1], [0, 0, 1, 1], [], []>} : vector<16x16xbf16>, vector<16x32xbf16>, vector<16x32xf32> -> vector<16x32xf32>
    %30 = tpu.reciprocal %27 {approx = true} : vector<16x1xf32> -> vector<16x1xf32>
    %31 = vector.broadcast %30 : vector<16x1xf32> to vector<16x32xf32>
    %32 = arith.mulf %29, %31 : vector<16x32xf32>
    %33 = vector.extract_strided_slice %11 {offsets = [0, 0], sizes = [32, 128], strides = [1, 1]} : vector<128x128xf32> to vector<32x128xf32>
    %cst_13 = arith.constant dense<0.000000e+00> : vector<16x128xf32>
    %34 = tpu.matmul %32, %33, %cst_13 {dimension_numbers = #tpu.dot_dimension_numbers<[1], [0], [0], [1], [0, 0, 1, 1], [], []>} : vector<16x32xf32>, vector<32x128xf32>, vector<16x128xf32> -> vector<16x128xf32>
    %35 = arith.addf %16, %34 : vector<16x128xf32>
    %36 = vector.extract_strided_slice %13 {offsets = [0, 32], sizes = [16, 32], strides = [1, 1]} : vector<16x128xbf16> to vector<16x32xbf16>
    %37 = vector.extract_strided_slice %14 {offsets = [0, 32], sizes = [16, 32], strides = [1, 1]} : vector<16x128xbf16> to vector<16x32xbf16>
    %38 = vector.extract_strided_slice %15 {offsets = [0, 32], sizes = [16, 32], strides = [1, 1]} : vector<16x128xbf16> to vector<16x32xbf16>
    %cst_14 = arith.constant dense<0.000000e+00> : vector<16x16xf32>
    %39 = tpu.matmul %36, %37, %cst_14 {dimension_numbers = #tpu.dot_dimension_numbers<[1], [1], [0], [0], [0, 0, 1, 0], [], []>} : vector<16x32xbf16>, vector<16x32xbf16>, vector<16x16xf32> -> vector<16x16xf32>
    %cst_15 = arith.constant dense<0xFF800000> : vector<16xf32>
    %40 = vector.multi_reduction <maximumf>, %39, %cst_15 [1] : vector<16x16xf32> to vector<16xf32>
    %41 = vector.shape_cast %40 : vector<16xf32> to vector<16x1xf32>
    %42 = vector.broadcast %41 : vector<16x1xf32> to vector<16x16xf32>
    %43 = arith.subf %39, %42 : vector<16x16xf32>
    %44 = math.exp %43 : vector<16x16xf32>
    %cst_16 = arith.constant dense<0.000000e+00> : vector<16xf32>
    %45 = vector.multi_reduction <add>, %44, %cst_16 [1] : vector<16x16xf32> to vector<16xf32>
    %46 = vector.shape_cast %45 : vector<16xf32> to vector<16x1xf32>
    %47 = arith.truncf %44 : vector<16x16xf32> to vector<16x16xbf16>
    %cst_17 = arith.constant dense<0.000000e+00> : vector<16x32xf32>
    %48 = tpu.matmul %47, %38, %cst_17 {dimension_numbers = #tpu.dot_dimension_numbers<[1], [0], [0], [1], [0, 0, 1, 1], [], []>} : vector<16x16xbf16>, vector<16x32xbf16>, vector<16x32xf32> -> vector<16x32xf32>
    %49 = tpu.reciprocal %46 {approx = true} : vector<16x1xf32> -> vector<16x1xf32>
    %50 = vector.broadcast %49 : vector<16x1xf32> to vector<16x32xf32>
    %51 = arith.mulf %48, %50 : vector<16x32xf32>
    %52 = vector.extract_strided_slice %11 {offsets = [32, 0], sizes = [32, 128], strides = [1, 1]} : vector<128x128xf32> to vector<32x128xf32>
    %cst_18 = arith.constant dense<0.000000e+00> : vector<16x128xf32>
    %53 = tpu.matmul %51, %52, %cst_18 {dimension_numbers = #tpu.dot_dimension_numbers<[1], [0], [0], [1], [0, 0, 1, 1], [], []>} : vector<16x32xf32>, vector<32x128xf32>, vector<16x128xf32> -> vector<16x128xf32>
    %54 = arith.addf %35, %53 : vector<16x128xf32>
    %55 = vector.extract_strided_slice %13 {offsets = [0, 64], sizes = [16, 32], strides = [1, 1]} : vector<16x128xbf16> to vector<16x32xbf16>
    %56 = vector.extract_strided_slice %14 {offsets = [0, 64], sizes = [16, 32], strides = [1, 1]} : vector<16x128xbf16> to vector<16x32xbf16>
    %57 = vector.extract_strided_slice %15 {offsets = [0, 64], sizes = [16, 32], strides = [1, 1]} : vector<16x128xbf16> to vector<16x32xbf16>
    %cst_19 = arith.constant dense<0.000000e+00> : vector<16x16xf32>
    %58 = tpu.matmul %55, %56, %cst_19 {dimension_numbers = #tpu.dot_dimension_numbers<[1], [1], [0], [0], [0, 0, 1, 0], [], []>} : vector<16x32xbf16>, vector<16x32xbf16>, vector<16x16xf32> -> vector<16x16xf32>
    %cst_20 = arith.constant dense<0xFF800000> : vector<16xf32>
    %59 = vector.multi_reduction <maximumf>, %58, %cst_20 [1] : vector<16x16xf32> to vector<16xf32>
    %60 = vector.shape_cast %59 : vector<16xf32> to vector<16x1xf32>
    %61 = vector.broadcast %60 : vector<16x1xf32> to vector<16x16xf32>
    %62 = arith.subf %58, %61 : vector<16x16xf32>
    %63 = math.exp %62 : vector<16x16xf32>
    %cst_21 = arith.constant dense<0.000000e+00> : vector<16xf32>
    %64 = vector.multi_reduction <add>, %63, %cst_21 [1] : vector<16x16xf32> to vector<16xf32>
    %65 = vector.shape_cast %64 : vector<16xf32> to vector<16x1xf32>
    %66 = arith.truncf %63 : vector<16x16xf32> to vector<16x16xbf16>
    %cst_22 = arith.constant dense<0.000000e+00> : vector<16x32xf32>
    %67 = tpu.matmul %66, %57, %cst_22 {dimension_numbers = #tpu.dot_dimension_numbers<[1], [0], [0], [1], [0, 0, 1, 1], [], []>} : vector<16x16xbf16>, vector<16x32xbf16>, vector<16x32xf32> -> vector<16x32xf32>
    %68 = tpu.reciprocal %65 {approx = true} : vector<16x1xf32> -> vector<16x1xf32>
    %69 = vector.broadcast %68 : vector<16x1xf32> to vector<16x32xf32>
    %70 = arith.mulf %67, %69 : vector<16x32xf32>
    %71 = vector.extract_strided_slice %11 {offsets = [64, 0], sizes = [32, 128], strides = [1, 1]} : vector<128x128xf32> to vector<32x128xf32>
    %cst_23 = arith.constant dense<0.000000e+00> : vector<16x128xf32>
    %72 = tpu.matmul %70, %71, %cst_23 {dimension_numbers = #tpu.dot_dimension_numbers<[1], [0], [0], [1], [0, 0, 1, 1], [], []>} : vector<16x32xf32>, vector<32x128xf32>, vector<16x128xf32> -> vector<16x128xf32>
    %73 = arith.addf %54, %72 : vector<16x128xf32>
    %74 = vector.extract_strided_slice %13 {offsets = [0, 96], sizes = [16, 32], strides = [1, 1]} : vector<16x128xbf16> to vector<16x32xbf16>
    %75 = vector.extract_strided_slice %14 {offsets = [0, 96], sizes = [16, 32], strides = [1, 1]} : vector<16x128xbf16> to vector<16x32xbf16>
    %76 = vector.extract_strided_slice %15 {offsets = [0, 96], sizes = [16, 32], strides = [1, 1]} : vector<16x128xbf16> to vector<16x32xbf16>
    %cst_24 = arith.constant dense<0.000000e+00> : vector<16x16xf32>
    %77 = tpu.matmul %74, %75, %cst_24 {dimension_numbers = #tpu.dot_dimension_numbers<[1], [1], [0], [0], [0, 0, 1, 0], [], []>} : vector<16x32xbf16>, vector<16x32xbf16>, vector<16x16xf32> -> vector<16x16xf32>
    %cst_25 = arith.constant dense<0xFF800000> : vector<16xf32>
    %78 = vector.multi_reduction <maximumf>, %77, %cst_25 [1] : vector<16x16xf32> to vector<16xf32>
    %79 = vector.shape_cast %78 : vector<16xf32> to vector<16x1xf32>
    %80 = vector.broadcast %79 : vector<16x1xf32> to vector<16x16xf32>
    %81 = arith.subf %77, %80 : vector<16x16xf32>
    %82 = math.exp %81 : vector<16x16xf32>
    %cst_26 = arith.constant dense<0.000000e+00> : vector<16xf32>
    %83 = vector.multi_reduction <add>, %82, %cst_26 [1] : vector<16x16xf32> to vector<16xf32>
    %84 = vector.shape_cast %83 : vector<16xf32> to vector<16x1xf32>
    %85 = arith.truncf %82 : vector<16x16xf32> to vector<16x16xbf16>
    %cst_27 = arith.constant dense<0.000000e+00> : vector<16x32xf32>
    %86 = tpu.matmul %85, %76, %cst_27 {dimension_numbers = #tpu.dot_dimension_numbers<[1], [0], [0], [1], [0, 0, 1, 1], [], []>} : vector<16x16xbf16>, vector<16x32xbf16>, vector<16x32xf32> -> vector<16x32xf32>
    %87 = tpu.reciprocal %84 {approx = true} : vector<16x1xf32> -> vector<16x1xf32>
    %88 = vector.broadcast %87 : vector<16x1xf32> to vector<16x32xf32>
    %89 = arith.mulf %86, %88 : vector<16x32xf32>
    %90 = vector.extract_strided_slice %11 {offsets = [96, 0], sizes = [32, 128], strides = [1, 1]} : vector<128x128xf32> to vector<32x128xf32>
    %cst_28 = arith.constant dense<0.000000e+00> : vector<16x128xf32>
    %91 = tpu.matmul %89, %90, %cst_28 {dimension_numbers = #tpu.dot_dimension_numbers<[1], [0], [0], [1], [0, 0, 1, 1], [], []>} : vector<16x32xf32>, vector<32x128xf32>, vector<16x128xf32> -> vector<16x128xf32>
    %92 = arith.addf %73, %91 : vector<16x128xf32>
    %93 = vector.broadcast %12 : vector<1x128xf32> to vector<16x128xf32>
    %94 = arith.addf %92, %93 : vector<16x128xf32>
    %c0_29 = arith.constant 0 : index
    %c0_30 = arith.constant 0 : index
    %95 = vector.load %arg7[%c0_29, %c0_30] : memref<32x128xf32, #tpu.memory_space<vmem>>, vector<16x128xf32>
    tpu.vector_store %arg7[%c0_29, %c0_30], %94 {strides = array<i32>} : memref<32x128xf32, #tpu.memory_space<vmem>>, vector<16x128xf32>,
    %96 = vector.extract_strided_slice %8 {offsets = [16, 0], sizes = [16, 128], strides = [1, 1]} : vector<32x128xbf16> to vector<16x128xbf16>
    %97 = vector.extract_strided_slice %9 {offsets = [16, 0], sizes = [16, 128], strides = [1, 1]} : vector<32x128xbf16> to vector<16x128xbf16>
    %98 = vector.extract_strided_slice %10 {offsets = [16, 0], sizes = [16, 128], strides = [1, 1]} : vector<32x128xbf16> to vector<16x128xbf16>
    %cst_31 = arith.constant 0.000000e+00 : f32
    %99 = vector.broadcast %cst_31 : f32 to vector<16x128xf32>
    %100 = vector.extract_strided_slice %96 {offsets = [0, 0], sizes = [16, 32], strides = [1, 1]} : vector<16x128xbf16> to vector<16x32xbf16>
    %101 = vector.extract_strided_slice %97 {offsets = [0, 0], sizes = [16, 32], strides = [1, 1]} : vector<16x128xbf16> to vector<16x32xbf16>
    %102 = vector.extract_strided_slice %98 {offsets = [0, 0], sizes = [16, 32], strides = [1, 1]} : vector<16x128xbf16> to vector<16x32xbf16>
    %cst_32 = arith.constant dense<0.000000e+00> : vector<16x16xf32>
    %103 = tpu.matmul %100, %101, %cst_32 {dimension_numbers = #tpu.dot_dimension_numbers<[1], [1], [0], [0], [0, 0, 1, 0], [], []>} : vector<16x32xbf16>, vector<16x32xbf16>, vector<16x16xf32> -> vector<16x16xf32>
    %cst_33 = arith.constant dense<0xFF800000> : vector<16xf32>
    %104 = vector.multi_reduction <maximumf>, %103, %cst_33 [1] : vector<16x16xf32> to vector<16xf32>
    %105 = vector.shape_cast %104 : vector<16xf32> to vector<16x1xf32>
    %106 = vector.broadcast %105 : vector<16x1xf32> to vector<16x16xf32>
    %107 = arith.subf %103, %106 : vector<16x16xf32>
    %108 = math.exp %107 : vector<16x16xf32>
    %cst_34 = arith.constant dense<0.000000e+00> : vector<16xf32>
    %109 = vector.multi_reduction <add>, %108, %cst_34 [1] : vector<16x16xf32> to vector<16xf32>
    %110 = vector.shape_cast %109 : vector<16xf32> to vector<16x1xf32>
    %111 = arith.truncf %108 : vector<16x16xf32> to vector<16x16xbf16>
    %cst_35 = arith.constant dense<0.000000e+00> : vector<16x32xf32>
    %112 = tpu.matmul %111, %102, %cst_35 {dimension_numbers = #tpu.dot_dimension_numbers<[1], [0], [0], [1], [0, 0, 1, 1], [], []>} : vector<16x16xbf16>, vector<16x32xbf16>, vector<16x32xf32> -> vector<16x32xf32>
    %113 = tpu.reciprocal %110 {approx = true} : vector<16x1xf32> -> vector<16x1xf32>
    %114 = vector.broadcast %113 : vector<16x1xf32> to vector<16x32xf32>
    %115 = arith.mulf %112, %114 : vector<16x32xf32>
    %116 = vector.extract_strided_slice %11 {offsets = [0, 0], sizes = [32, 128], strides = [1, 1]} : vector<128x128xf32> to vector<32x128xf32>
    %cst_36 = arith.constant dense<0.000000e+00> : vector<16x128xf32>
    %117 = tpu.matmul %115, %116, %cst_36 {dimension_numbers = #tpu.dot_dimension_numbers<[1], [0], [0], [1], [0, 0, 1, 1], [], []>} : vector<16x32xf32>, vector<32x128xf32>, vector<16x128xf32> -> vector<16x128xf32>
    %118 = arith.addf %99, %117 : vector<16x128xf32>
    %119 = vector.extract_strided_slice %96 {offsets = [0, 32], sizes = [16, 32], strides = [1, 1]} : vector<16x128xbf16> to vector<16x32xbf16>
    %120 = vector.extract_strided_slice %97 {offsets = [0, 32], sizes = [16, 32], strides = [1, 1]} : vector<16x128xbf16> to vector<16x32xbf16>
    %121 = vector.extract_strided_slice %98 {offsets = [0, 32], sizes = [16, 32], strides = [1, 1]} : vector<16x128xbf16> to vector<16x32xbf16>
    %cst_37 = arith.constant dense<0.000000e+00> : vector<16x16xf32>
    %122 = tpu.matmul %119, %120, %cst_37 {dimension_numbers = #tpu.dot_dimension_numbers<[1], [1], [0], [0], [0, 0, 1, 0], [], []>} : vector<16x32xbf16>, vector<16x32xbf16>, vector<16x16xf32> -> vector<16x16xf32>
    %cst_38 = arith.constant dense<0xFF800000> : vector<16xf32>
    %123 = vector.multi_reduction <maximumf>, %122, %cst_38 [1] : vector<16x16xf32> to vector<16xf32>
    %124 = vector.shape_cast %123 : vector<16xf32> to vector<16x1xf32>
    %125 = vector.broadcast %124 : vector<16x1xf32> to vector<16x16xf32>
    %126 = arith.subf %122, %125 : vector<16x16xf32>
    %127 = math.exp %126 : vector<16x16xf32>
    %cst_39 = arith.constant dense<0.000000e+00> : vector<16xf32>
    %128 = vector.multi_reduction <add>, %127, %cst_39 [1] : vector<16x16xf32> to vector<16xf32>
    %129 = vector.shape_cast %128 : vector<16xf32> to vector<16x1xf32>
    %130 = arith.truncf %127 : vector<16x16xf32> to vector<16x16xbf16>
    %cst_40 = arith.constant dense<0.000000e+00> : vector<16x32xf32>
    %131 = tpu.matmul %130, %121, %cst_40 {dimension_numbers = #tpu.dot_dimension_numbers<[1], [0], [0], [1], [0, 0, 1, 1], [], []>} : vector<16x16xbf16>, vector<16x32xbf16>, vector<16x32xf32> -> vector<16x32xf32>
    %132 = tpu.reciprocal %129 {approx = true} : vector<16x1xf32> -> vector<16x1xf32>
    %133 = vector.broadcast %132 : vector<16x1xf32> to vector<16x32xf32>
    %134 = arith.mulf %131, %133 : vector<16x32xf32>
    %135 = vector.extract_strided_slice %11 {offsets = [32, 0], sizes = [32, 128], strides = [1, 1]} : vector<128x128xf32> to vector<32x128xf32>
    %cst_41 = arith.constant dense<0.000000e+00> : vector<16x128xf32>
    %136 = tpu.matmul %134, %135, %cst_41 {dimension_numbers = #tpu.dot_dimension_numbers<[1], [0], [0], [1], [0, 0, 1, 1], [], []>} : vector<16x32xf32>, vector<32x128xf32>, vector<16x128xf32> -> vector<16x128xf32>
    %137 = arith.addf %118, %136 : vector<16x128xf32>
    %138 = vector.extract_strided_slice %96 {offsets = [0, 64], sizes = [16, 32], strides = [1, 1]} : vector<16x128xbf16> to vector<16x32xbf16>
    %139 = vector.extract_strided_slice %97 {offsets = [0, 64], sizes = [16, 32], strides = [1, 1]} : vector<16x128xbf16> to vector<16x32xbf16>
    %140 = vector.extract_strided_slice %98 {offsets = [0, 64], sizes = [16, 32], strides = [1, 1]} : vector<16x128xbf16> to vector<16x32xbf16>
    %cst_42 = arith.constant dense<0.000000e+00> : vector<16x16xf32>
    %141 = tpu.matmul %138, %139, %cst_42 {dimension_numbers = #tpu.dot_dimension_numbers<[1], [1], [0], [0], [0, 0, 1, 0], [], []>} : vector<16x32xbf16>, vector<16x32xbf16>, vector<16x16xf32> -> vector<16x16xf32>
    %cst_43 = arith.constant dense<0xFF800000> : vector<16xf32>
    %142 = vector.multi_reduction <maximumf>, %141, %cst_43 [1] : vector<16x16xf32> to vector<16xf32>
    %143 = vector.shape_cast %142 : vector<16xf32> to vector<16x1xf32>
    %144 = vector.broadcast %143 : vector<16x1xf32> to vector<16x16xf32>
    %145 = arith.subf %141, %144 : vector<16x16xf32>
    %146 = math.exp %145 : vector<16x16xf32>
    %cst_44 = arith.constant dense<0.000000e+00> : vector<16xf32>
    %147 = vector.multi_reduction <add>, %146, %cst_44 [1] : vector<16x16xf32> to vector<16xf32>
    %148 = vector.shape_cast %147 : vector<16xf32> to vector<16x1xf32>
    %149 = arith.truncf %146 : vector<16x16xf32> to vector<16x16xbf16>
    %cst_45 = arith.constant dense<0.000000e+00> : vector<16x32xf32>
    %150 = tpu.matmul %149, %140, %cst_45 {dimension_numbers = #tpu.dot_dimension_numbers<[1], [0], [0], [1], [0, 0, 1, 1], [], []>} : vector<16x16xbf16>, vector<16x32xbf16>, vector<16x32xf32> -> vector<16x32xf32>
    %151 = tpu.reciprocal %148 {approx = true} : vector<16x1xf32> -> vector<16x1xf32>
    %152 = vector.broadcast %151 : vector<16x1xf32> to vector<16x32xf32>
    %153 = arith.mulf %150, %152 : vector<16x32xf32>
    %154 = vector.extract_strided_slice %11 {offsets = [64, 0], sizes = [32, 128], strides = [1, 1]} : vector<128x128xf32> to vector<32x128xf32>
    %cst_46 = arith.constant dense<0.000000e+00> : vector<16x128xf32>
    %155 = tpu.matmul %153, %154, %cst_46 {dimension_numbers = #tpu.dot_dimension_numbers<[1], [0], [0], [1], [0, 0, 1, 1], [], []>} : vector<16x32xf32>, vector<32x128xf32>, vector<16x128xf32> -> vector<16x128xf32>
    %156 = arith.addf %137, %155 : vector<16x128xf32>
    %157 = vector.extract_strided_slice %96 {offsets = [0, 96], sizes = [16, 32], strides = [1, 1]} : vector<16x128xbf16> to vector<16x32xbf16>
    %158 = vector.extract_strided_slice %97 {offsets = [0, 96], sizes = [16, 32], strides = [1, 1]} : vector<16x128xbf16> to vector<16x32xbf16>
    %159 = vector.extract_strided_slice %98 {offsets = [0, 96], sizes = [16, 32], strides = [1, 1]} : vector<16x128xbf16> to vector<16x32xbf16>
    %cst_47 = arith.constant dense<0.000000e+00> : vector<16x16xf32>
    %160 = tpu.matmul %157, %158, %cst_47 {dimension_numbers = #tpu.dot_dimension_numbers<[1], [1], [0], [0], [0, 0, 1, 0], [], []>} : vector<16x32xbf16>, vector<16x32xbf16>, vector<16x16xf32> -> vector<16x16xf32>
    %cst_48 = arith.constant dense<0xFF800000> : vector<16xf32>
    %161 = vector.multi_reduction <maximumf>, %160, %cst_48 [1] : vector<16x16xf32> to vector<16xf32>
    %162 = vector.shape_cast %161 : vector<16xf32> to vector<16x1xf32>
    %163 = vector.broadcast %162 : vector<16x1xf32> to vector<16x16xf32>
    %164 = arith.subf %160, %163 : vector<16x16xf32>
    %165 = math.exp %164 : vector<16x16xf32>
    %cst_49 = arith.constant dense<0.000000e+00> : vector<16xf32>
    %166 = vector.multi_reduction <add>, %165, %cst_49 [1] : vector<16x16xf32> to vector<16xf32>
    %167 = vector.shape_cast %166 : vector<16xf32> to vector<16x1xf32>
    %168 = arith.truncf %165 : vector<16x16xf32> to vector<16x16xbf16>
    %cst_50 = arith.constant dense<0.000000e+00> : vector<16x32xf32>
    %169 = tpu.matmul %168, %159, %cst_50 {dimension_numbers = #tpu.dot_dimension_numbers<[1], [0], [0], [1], [0, 0, 1, 1], [], []>} : vector<16x16xbf16>, vector<16x32xbf16>, vector<16x32xf32> -> vector<16x32xf32>
    %170 = tpu.reciprocal %167 {approx = true} : vector<16x1xf32> -> vector<16x1xf32>
    %171 = vector.broadcast %170 : vector<16x1xf32> to vector<16x32xf32>
    %172 = arith.mulf %169, %171 : vector<16x32xf32>
    %173 = vector.extract_strided_slice %11 {offsets = [96, 0], sizes = [32, 128], strides = [1, 1]} : vector<128x128xf32> to vector<32x128xf32>
    %cst_51 = arith.constant dense<0.000000e+00> : vector<16x128xf32>
    %174 = tpu.matmul %172, %173, %cst_51 {dimension_numbers = #tpu.dot_dimension_numbers<[1], [0], [0], [1], [0, 0, 1, 1], [], []>} : vector<16x32xf32>, vector<32x128xf32>, vector<16x128xf32> -> vector<16x128xf32>
    %175 = arith.addf %156, %174 : vector<16x128xf32>
    %176 = vector.broadcast %12 : vector<1x128xf32> to vector<16x128xf32>
    %177 = arith.addf %175, %176 : vector<16x128xf32>
    %c16 = arith.constant 16 : index
    %c0_52 = arith.constant 0 : index
    %178 = vector.load %arg7[%c16, %c0_52] : memref<32x128xf32, #tpu.memory_space<vmem>>, vector<16x128xf32>
    tpu.vector_store %arg7[%c16, %c0_52], %177 {strides = array<i32>} : memref<32x128xf32, #tpu.memory_space<vmem>>, vector<16x128xf32>,
    return
  }
  func.func @transform_0(%arg0: i32) -> (i32, i32) {
    %c0_i32 = arith.constant 0 : i32
    %c0_i32_0 = arith.constant 0 : i32
    %c0_i32_1 = arith.constant 0 : i32
    return %c0_i32, %c0_i32_0 : i32, i32
  }
  func.func @transform_1(%arg0: i32) -> (i32, i32) {
    %c0_i32 = arith.constant 0 : i32
    %c0_i32_0 = arith.constant 0 : i32
    %c0_i32_1 = arith.constant 0 : i32
    return %c0_i32, %c0_i32_0 : i32, i32
  }
  func.func @transform_2(%arg0: i32) -> (i32, i32) {
    %c0_i32 = arith.constant 0 : i32
    %c0_i32_0 = arith.constant 0 : i32
    %c0_i32_1 = arith.constant 0 : i32
    return %c0_i32, %c0_i32_0 : i32, i32
  }
  func.func @transform_3(%arg0: i32) -> (i32, i32) {
    %c0_i32 = arith.constant 0 : i32
    %c0_i32_0 = arith.constant 0 : i32
    %c0_i32_1 = arith.constant 0 : i32
    return %c0_i32, %c0_i32_0 : i32, i32
  }
  func.func @transform_4(%arg0: i32) -> (i32, i32) {
    %c0_i32 = arith.constant 0 : i32
    %c0_i32_0 = arith.constant 0 : i32
    %c0_i32_1 = arith.constant 0 : i32
    return %c0_i32, %c0_i32_0 : i32, i32
  }
  func.func @transform_5(%arg0: i32) -> (i32, i32) {
    %c0_i32 = arith.constant 0 : i32
    %c0_i32_0 = arith.constant 0 : i32
    %c0_i32_1 = arith.constant 0 : i32
    return %c0_i32, %c0_i32_0 : i32, i32
  }
  func.func @transform_6(%arg0: i32) -> (i32, i32) {
    %c0_i32 = arith.constant 0 : i32
    %c0_i32_0 = arith.constant 0 : i32
    %c0_i32_1 = arith.constant 0 : i32
    return %c0_i32, %c0_i32_0 : i32, i32
  }
}

</mosaic_0001>

<bundles_post_ra>
// kernel: _mha_pallas.1
= control target key start
LH: loop header
LB: loop body
LE: loop exit
PB: predicated region body
PF: predicated region fallthrough
CT: control target
= control target key end

     0   :  { %11 = vsyncpa [#allocation3], 0  ;;  %s1653_s0 = inlined_call_operand.hbm [shape: f32[32,32], index: 0, kind: input, shape index: {}]   ;;  %s1654_s1 = inlined_call_operand.hbm [shape: f32[32,32], index: 1, kind: input, shape index: {}]   ;;  %s1655_s2 = inlined_call_operand.hbm [shape: f32[32,32], index: 2, kind: input, shape index: {}]   ;;  %s1656_s3 = inlined_call_operand.hbm [shape: f32[32,384], index: 3, kind: input, shape index: {}]   ;;  %s1657_s4 = inlined_call_operand.hbm [shape: f32[128,128], index: 4, kind: input, shape index: {}]   ;;  %s1658_s5 = inlined_call_operand.vmem [shape: f32[1,128], index: 5, kind: input, shape index: {}]   ;;  %s1659_s6 = inlined_call_operand.hbm [shape: f32[32,128], index: 6, kind: output, shape index: {}]  }
   0x1   :  { %12 = vsyncpa [#allocation6], 0 }
   0x2   :  { %13 = vsyncpa [#allocation9], 0 }
   0x3   :  { %14 = vsyncpa [#allocation4], 0  ;;  %s32_s23 = sshll.u32 %s1654_s1, 4  ;;  %s1361_s24 = smov [#allocation5]   ;;  %s33_s23 = int_to_ptr.hbm [resolvable:$true] %s32_s23 }
   0x4   :  { %s34_s25 = sshll.u32 %s1361_s24, 4  ;;  %s58_s28 = sshll.u32 %s1656_s3, 4  ;;  %s35_s25 = int_to_ptr.vmem [resolvable:$true] %s34_s25  ;;  %s59_s28 = int_to_ptr.hbm [resolvable:$true] %s58_s28 }
   0x5   :  { %s1362_s29 = smov 128   ;;  %s1363_s30 = smov 8  }
   0x6   :  { %40 = dma.hbm_to_vmem [thread:$0]  %s33_s23, 512, %s35_s25, [#allocation6], %s1362_s29, %s1362_s29, %s1363_s30  }
   0x7   :  { %s1364_s7 = smov [#allocation8]   ;;  %s1365_s9 = smov 384  }
   0x8   :  { %s60_s8 = sshll.u32 %s1364_s7, 4  ;;  %s1366_s1 = smov 24   ;;  %s61_s8 = int_to_ptr.vmem [resolvable:$true] %s60_s8 }
   0x9   :  { %66 = dma.hbm_to_vmem [thread:$0]  %s59_s28, 1536, %s61_s8, [#allocation9], %s1365_s9, %s1365_s9, %s1366_s1  }
   0xa   :  { %s19_s12 = sshll.u32 %s1653_s0, 4  ;;  %s1367_s13 = smov [#allocation2]   ;;  %s20_s12 = int_to_ptr.hbm [resolvable:$true] %s19_s12 }
   0xb   :  { %s21_s3 = sshll.u32 %s1367_s13, 4  ;;  %s45_s16 = sshll.u32 %s1655_s2, 4  ;;  %s22_s3 = int_to_ptr.vmem [resolvable:$true] %s21_s3  ;;  %s46_s16 = int_to_ptr.hbm [resolvable:$true] %s45_s16 }
   0xc   :  { %27 = dma.hbm_to_vmem [thread:$0]  %s20_s12, 512, %s22_s3, [#allocation3], %s1362_s29, %s1362_s29, %s1363_s30  }
   0xd   :  { %s1368_s17 = smov [#allocation7]   ;;  %s71_s21 = sshll.u32 %s1657_s4, 4  ;;  %s72_s21 = int_to_ptr.hbm [resolvable:$true] %s71_s21 }
   0xe   :  { %s47_s18 = sshll.u32 %s1368_s17, 4  ;;  %s1369_s0 = smov [#allocation10]   ;;  %s48_s18 = int_to_ptr.vmem [resolvable:$true] %s47_s18 }
   0xf   :  { %53 = dma.hbm_to_vmem [thread:$0]  %s46_s16, 512, %s48_s18, [#allocation6], %s1362_s29, %s1362_s29, %s1363_s30  }
  0x10   :  { %s73_s22 = sshll.u32 %s1369_s0, 4  ;;  %s74_s22 = int_to_ptr.vmem [resolvable:$true] %s73_s22 }
  0x11   :  { %79 = dma.hbm_to_vmem [thread:$0]  %s72_s21, 2048, %s74_s22, [#allocation9], %s1362_s29, %s1362_s29, %s1363_s30  }
  0x12   :  { %1353 = dma.done.wait [#allocation3], 512  }
  0x13   :  { %1354 = vsyncadd [#allocation3], 4294966784 }
  0x14   :  { %1355 = dma.done.wait [#allocation6], 1024  }
  0x15   :  { %1356 = vsyncadd [#allocation6], 4294966272 }
  0x16   :  { %1357 = dma.done.wait [#allocation9], 3584  }
  0x17   :  { %1358 = vsyncadd [#allocation9], 4294963712  ;;  %v113_v0 = vld [vmem:[#allocation8 + $0x50] sm:$0xff]  ;;  %v112_v1 = vld [vmem:[#allocation8 + $0x48] sm:$0xff]  ;;  %vm119_vm0 = vcmask 261120   ;;  %s1370_s2 = smov 64  }
  0x18   :  { %v110_v2 = vld [vmem:[#allocation8 + $0x38] sm:$0xff]  ;;  %173 = vmatpush.msra.mxu1 %v113_v0  ;;  %144 = vmatpush.msra.mxu0 %v112_v1  ;;  %v109_v3 = vld [vmem:[#allocation8 + $0x30] sm:$0xff]  ;;  %v107_v4 = vld [vmem:[#allocation8 + $0x20] sm:$0xff]  ;;  %s1371_s4 = smov 96   ;;  %vm282_vm1 = vcmask 130048   ;;  %s1372_s23 = smov 32  }
  0x19   :  { %v106_v5 = vld [vmem:[#allocation8 + $0x18] sm:$0xff]  ;;  %1123 = vmatpush.msra.mxu2 %v112_v1  ;;  %1127 = vmatpush.msra.mxu3 %v113_v0  ;;  %v104_v6 = vld [vmem:[#allocation8 + $0x8] sm:$0xff]  ;;  %v103_v7 = vld [vmem:[#allocation8] sm:$0xff]  ;;  %s1064_s7 = sshll.u32 %s1659_s6, 4  ;;  %s1065_s7 = int_to_ptr.hbm [resolvable:$true] %s1064_s7 }
  0x1a   :  { %174 = vmatpush.msra.mxu1 %v110_v2  ;;  %145 = vmatpush.msra.mxu0 %v109_v3  ;;  %v115_v8 = vld [vmem:[#allocation2] sm:$0xff]  ;;  %v118_v9 = vld [vmem:[#allocation2 + $0x18] sm:$0xff]  ;;  %v108_v12 = vld [vmem:[#allocation8 + $0x28] sm:$0xff] }
  0x1b   :  { %1124 = vmatpush.msra.mxu2 %v109_v3  ;;  %1128 = vmatpush.msra.mxu3 %v110_v2  ;;  %v114_v10 = vld [vmem:[#allocation8 + $0x58] sm:$0xff]  ;;  %v111_v11 = vld [vmem:[#allocation8 + $0x40] sm:$0xff]  ;;  %v116_v13 = vld [vmem:[#allocation2 + $0x8] sm:$0xff] }
  0x1c   :  { %175 = vmatpush.msra.mxu1 %v107_v4  ;;  %146 = vmatpush.msra.mxu0 %v106_v5  ;;  %v105_v14 = vld [vmem:[#allocation8 + $0x10] sm:$0xff] }
  0x1d   :  { %1125 = vmatpush.msra.mxu2 %v106_v5  ;;  %1129 = vmatpush.msra.mxu3 %v107_v4  ;;  %v117_v40 = vld [vmem:[#allocation2 + $0x10] sm:$0xff] }
  0x1e   :  { %176 = vmatpush.msra.mxu1 %v104_v6  ;;  %147 = vmatpush.msra.mxu0 %v103_v7 }
  0x1f   :  { %1083 = vmatmul.msk.f32.vlgmr.msra.gmra.mxu1 %vm119_vm0, %v115_v8  ;;  %1079 = vmatmul.msk.f32.vlgmr.msra.gmra.mxu0 %vm119_vm0, %v115_v8 }
  0x20   :  { %1126 = vmatpush.msra.mxu2 %v103_v7  ;;  %1130 = vmatpush.msra.mxu3 %v104_v6 }
  0x21   :  { %1082 = vmatmul.msk.f32.vlgmr.msra.gmra.mxu2 %vm119_vm0, %v118_v9  ;;  %1086 = vmatmul.msk.f32.vlgmr.msra.gmra.mxu3 %vm119_vm0, %v118_v9 }
  0x22   :  { %202 = vmatpush.msrb.mxu2 %v114_v10 }
  0x24   :  { %203 = vmatpush.msrb.mxu2 %v111_v11 }
  0x26   :  { %204 = vmatpush.msrb.mxu2 %v108_v12 }
  0x27   :  { %1084 = vmatmul.msk.f32.gmra.mxu1 %vm119_vm0, %v116_v13  ;;  %1080 = vmatmul.msk.f32.gmra.mxu0 %vm119_vm0, %v116_v13 }
  0x28   :  { %205 = vmatpush.msrb.mxu2 %v105_v14 }
  0x29   :  { %1087 = vmatmul.msk.f32.vlgmr.msrb.gmra.mxu2 %vm119_vm0, %v115_v8 }
  0x2f   :  { %1081 = vmatmul.msk.f32.gmra.mxu0 %vm119_vm0, %v117_v40  ;;  %1085 = vmatmul.msk.f32.gmra.mxu1 %vm119_vm0, %v117_v40 }
  0x31   :  { %1088 = vmatmul.msk.f32.gmra.mxu2 %vm119_vm0, %v116_v13 }
  0x39   :  { %1089 = vmatmul.msk.f32.gmra.mxu2 %vm119_vm0, %v117_v40 }
  0x41   :  { %1090 = vmatmul.msk.f32.gmra.mxu2 %vm119_vm0, %v118_v9 }
  0x9c   :  { %v178_v15 = vpop.f32.mrf.mxu1  ;;  %v149_v16 = vpop.f32.mrf.mxu0 }
  0x9d   :  { %v227_v17 = vpack.c.bf16 %v178_v15, %v178_v15  ;;  %v219_v24 = vmul.f32 0.17677669, %v149_v16 }
  0x9f   :  { %v259_v23 = vunpack.c.l.b16 %v227_v17  ;;  %v223_v28 = vpack.c.bf16 %v219_v24, %v219_v24 }
  0xa1   :  { %v254_v32 = vunpack.c.l.b16 %v223_v28 }
  0xa4   :  { %v181_v18 = vpop.f32.mrf.mxu1  ;;  %v152_v19 = vpop.f32.mrf.mxu0 }
  0xa5   :  { %v228_v20 = vpack.c.bf16 %v181_v18, %v181_v18  ;;  %v220_v21 = vmul.f32 0.17677669, %v152_v19  ;;  %v158_v22 = vpop.f32.mrf.mxu2  ;;  %v1474_v46 = vpop.f32.mrf.mxu3 }
  0xa6   :  { %v222_v52 = vmul.f32 0.17677669, %v158_v22 }
  0xa7   :  { %v260_v25 = vunpack.c.l.b16 %v228_v20  ;;  %v224_v27 = vpack.c.bf16 %v220_v21, %v220_v21 }
  0xa8   :  { %v226_v53 = vpack.c.bf16 %v222_v52, %v222_v52  ;;  %v1522_v52 = vld [vmem:[#allocation10 + $0x40] sm:$0xff] }
  0xa9   :  { %v1444_v26 = vpack.c.b16 %v260_v25, %v259_v23  ;;  %v255_v30 = vunpack.c.l.b16 %v224_v27 }
  0xaa   :  { %v660_v56 = vunpack.c.l.b16 %v226_v53 }
  0xab   :  { %456 = vrot.lane.b32.xlu1 %v1444_v26, %s1370_s2  ;;  %331 = vrot.lane.b32.xlu0 %v1444_v26, %s1371_s4  ;;  %v266_v29 = vsel %vm119_vm0, %v1444_v26, 0  ;;  %v1452_v33 = vpack.c.b16 %v255_v30, %v254_v32 }
  0xac   :  { %275 = vmatpush.bf16.xpose.msrb.mxu3 %v266_v29  ;;  %v155_v54 = vpop.f32.mrf.mxu0 }
  0xad   :  { %v207_v31 = vpop.f32.mrf.mxu2  ;;  %v221_v55 = vmul.f32 0.17677669, %v155_v54 }
  0xae   :  { %v231_v34 = vpack.c.bf16 %v207_v31, %v207_v31 }
  0xaf   :  { %v225_v57 = vpack.c.bf16 %v221_v55, %v221_v55  ;;  %v1525_v55 = vld [vmem:[#allocation10 + $0x18] sm:$0xff] }
  0xb0   :  { %v304_v36 = vunpack.c.l.b16 %v231_v34 }
  0xb1   :  { %v659_v58 = vunpack.c.l.b16 %v225_v57 }
  0xb3   :  { %454 = vrot.lane.b32.xlu1 %v1452_v33, %s1370_s2  ;;  %329 = vrot.lane.b32.xlu0 %v1452_v33, %s1371_s4  ;;  %v1480_v59 = vpack.c.b16 %v660_v56, %v659_v58  ;;  %v1528_v56 = vld [vmem:[#allocation10 + $0x10] sm:$0xff]  ;;  %v1531_v58 = vld [vmem:[#allocation10 + $0x8] sm:$0xff] }
  0xb4   :  { %1091 = vmatmul.msk.bf16.vlgmr.msrb.gmra.mxu3 %vm119_vm0, %v1452_v33 }
  0xb5   :  { %v210_v35 = vpop.f32.mrf.mxu2 }
  0xb6   :  { %v232_v37 = vpack.c.bf16 %v210_v35, %v210_v35 }
  0xb8   :  { %v305_v38 = vunpack.c.l.b16 %v232_v37 }
  0xba   :  { %v1460_v39 = vpack.c.b16 %v305_v38, %v304_v36 }
  0xbc   :  { %372 = vrot.lane.b32.xlu0 %v1460_v39, %s1371_s4  ;;  %318 = vmatpush.bf16.msra.mxu3 %v1460_v39 }
  0xc0   :  { %443 = vmatpush.msrb.mxu3 %v1525_v55 }
  0xc2   :  { %444 = vmatpush.msrb.mxu3 %v1528_v56 }
  0xc4   :  { %497 = vrot.lane.b32.xlu0 %v1460_v39, %s1370_s2  ;;  %445 = vmatpush.msrb.mxu3 %v1531_v58 }
 0x11d   :  { %v457_v41 = vpop.permute.xlu1 %456  ;;  %v332_v42 = vpop.permute.xlu0 %331 }
 0x11e   :  { %v462_v43 = vsel %vm119_vm0, %v457_v41, 0  ;;  %v337_v44 = vsel %vm119_vm0, %v332_v42, 0  ;;  %v184_v42 = vpop.f32.mrf.mxu1 }
 0x11f   :  { %346 = vmatpush.bf16.xpose.msrb.mxu0 %v337_v44  ;;  %v229_v44 = vpack.c.bf16 %v184_v42, %v184_v42 }
 0x125   :  { %v330_v45 = vpop.permute.xlu0 %329  ;;  %v455_v47 = vpop.permute.xlu1 %454 }
 0x126   :  { %1093 = vmatmul.msk.bf16.vlgmr.msrb.gmra.mxu0 %vm119_vm0, %v330_v45 }
 0x127   :  { %471 = vmatpush.bf16.xpose.msra.mxu0 %v462_v43  ;;  %v230_v43 = vpack.c.bf16 %v1474_v46, %v1474_v46  ;;  %v240_v46 = vld [vmem:[#allocation10 + $0x28] sm:$0xff] }
 0x129   :  { %v665_v45 = vunpack.c.l.b16 %v230_v43 }
 0x12e   :  { %v373_v51 = vpop.permute.xlu0 %372 }
 0x12f   :  { %385 = vmatpush.bf16.msrb.mxu1 %v373_v51  ;;  %v1519_v51 = vld [vmem:[#allocation10 + $0x48] sm:$0xff] }
 0x136   :  { %1099 = vmatmul.msk.bf16.vlgmr.msra.gmra.mxu0 %vm119_vm0, %v455_v47  ;;  %v498_v60 = vpop.permute.xlu0 %497  ;;  %v664_v47 = vunpack.c.l.b16 %v229_v44 }
 0x137   :  { %v1477_v48 = vpop.f32.mrf.mxu3  ;;  %510 = vmatpush.bf16.msra.mxu1 %v498_v60  ;;  %v1534_v60 = vld [vmem:[#allocation10] sm:$0xff] }
 0x138   :  { %v283_v5 = vsel %vm282_vm1, %v1477_v48, -inf  ;;  %446 = vmatpush.msrb.mxu3 %v1534_v60 }
 0x13f   :  { %v279_v49 = vpop.f32.mrf.mxu3 }
 0x140   :  { %v286_v50 = vsel %vm282_vm1, %v279_v49, -inf }
 0x141   :  { %287 = vmax.xlane.f32.xlu0 %v286_v50  ;;  %v1516_v50 = vld [vmem:[#allocation10 + $0x50] sm:$0xff] }
 0x1a3   :  { %v348_v61 = vpop.f32.mrf.mxu0 }
 0x1a4   :  { %v353_v62 = vsel %vm282_vm1, %v348_v61, -inf }
 0x1a5   :  { %354 = vmax.xlane.f32.xlu2 %v353_v62 }
 0x1ab   :  { %v350_v63 = vpop.f32.mrf.mxu0 }
 0x1ac   :  { %v356_v0 = vsel %vm282_vm1, %v350_v63, -inf }
 0x1ad   :  { %357 = vmax.xlane.f32.xlu2 %v356_v0 }
 0x1b3   :  { %v473_v1 = vpop.f32.mrf.mxu0 }
 0x1b4   :  { %v478_v2 = vsel %vm282_vm1, %v473_v1, -inf  ;;  %v288_v20 = vpop.xlane.xlu0 %287 }
 0x1b5   :  { %479 = vmax.xlane.f32.xlu1 %v478_v2  ;;  %v290_v24 = vsub.f32 %v279_v49, %v288_v20  ;;  %v239_v49 = vld [vmem:[#allocation10 + $0x20] sm:$0xff] }
 0x1b7   :  { %v293_v28 = vmul.f32 1.442695, %v290_v24 }
 0x1bb   :  { %v475_v3 = vpop.f32.mrf.mxu0 }
 0x1bc   :  { %v481_v4 = vsel %vm282_vm1, %v475_v3, -inf }
 0x1bd   :  { %482 = vmax.xlane.f32.xlu2 %v481_v4 }
 0x1c5   :  { %284 = vmax.xlane.f32.xlu2 %v283_v5 }
 0x218   :  { %v355_v6 = vpop.xlane.xlu2 %354 }
 0x219   :  { %v359_v7 = vsub.f32 %v348_v61, %v355_v6 }
 0x21b   :  { %v361_v8 = vmul.f32 1.442695, %v359_v7 }
 0x21d   :  { %1145 = vpow2.f32 %v361_v8 }
 0x220   :  { %v358_v9 = vpop.xlane.xlu2 %357 }
 0x221   :  { %v360_v10 = vsub.f32 %v350_v63, %v358_v9 }
 0x223   :  { %v1146_v11 = vpop.eup %1145  ;;  %v363_v12 = vmul.f32 1.442695, %v360_v10 }
 0x224   :  { %v365_v13 = vsel %vm282_vm1, %v1146_v11, 0.0 }
 0x225   :  { %1147 = vpow2.f32 %v363_v12  ;;  %366 = vadd.xlane.f32.xlu2 %v365_v13 }
 0x228   :  { %v480_v14 = vpop.xlane.xlu1 %479 }
 0x229   :  { %v484_v15 = vsub.f32 %v473_v1, %v480_v14 }
 0x22b   :  { %v1148_v16 = vpop.eup %1147  ;;  %v486_v17 = vmul.f32 1.442695, %v484_v15  ;;  %v213_v15 = vpop.f32.mrf.mxu2 }
 0x22c   :  { %v368_v18 = vsel %vm282_vm1, %v1148_v16, 0.0  ;;  %v371_v19 = vpack.c.bf16 %v1148_v16, %v1146_v11 }
 0x22d   :  { %1149 = vpow2.f32 %v486_v17  ;;  %369 = vadd.xlane.f32.xlu2 %v368_v18 }
 0x22e   :  { %1094 = vmatmul.msk.bf16.vlgmr.msrb.gmra.mxu1 %vm282_vm1, %v371_v19  ;;  %v233_v19 = vpack.c.bf16 %v213_v15, %v213_v15 }
 0x230   :  { %v483_v21 = vpop.xlane.xlu2 %482 }
 0x231   :  { %v485_v22 = vsub.f32 %v475_v3, %v483_v21 }
 0x233   :  { %v1150_v23 = vpop.eup %1149  ;;  %v488_v25 = vmul.f32 1.442695, %v485_v22 }
 0x234   :  { %v490_v27 = vsel %vm282_vm1, %v1150_v23, 0.0 }
 0x235   :  { %1151 = vpow2.f32 %v488_v25  ;;  %491 = vadd.xlane.f32.xlu2 %v490_v27  ;;  %v216_v27 = vpop.f32.mrf.mxu2 }
 0x236   :  { %1153 = vpow2.f32 %v293_v28 }
 0x238   :  { %v285_v29 = vpop.xlane.xlu2 %284 }
 0x239   :  { %v289_v30 = vsub.f32 %v1477_v48, %v285_v29  ;;  %v1506_v48 = vpack.c.b16 %v665_v45, %v664_v47  ;;  %v708_v29 = vunpack.c.l.b16 %v233_v19 }
 0x23b   :  { %v1152_v31 = vpop.eup %1151  ;;  %v291_v32 = vmul.f32 1.442695, %v289_v30  ;;  %v671_v0 = vsel %vm119_vm0, %v1506_v48, 0  ;;  %v234_v30 = vpack.c.bf16 %v216_v27, %v216_v27 }
 0x23c   :  { %v496_v34 = vpack.c.bf16 %v1152_v31, %v1150_v23  ;;  %v493_v35 = vsel %vm282_vm1, %v1152_v31, 0.0  ;;  %v1154_v36 = vpop.eup %1153 }
 0x23d   :  { %1155 = vpow2.f32 %v291_v32  ;;  %494 = vadd.xlane.f32.xlu2 %v493_v35  ;;  %v298_v40 = vsel %vm282_vm1, %v1154_v36, 0.0  ;;  %v709_v31 = vunpack.c.l.b16 %v234_v30 }
 0x23e   :  { %1100 = vmatmul.msk.bf16.vlgmr.msra.gmra.mxu1 %vm282_vm1, %v496_v34 }
 0x23f   :  { %v1552_v32 = vpack.c.b16 %v709_v31, %v708_v29 }
 0x243   :  { %v1156_v37 = vpop.eup %1155 }
 0x244   :  { %v301_v38 = vpack.c.bf16 %v1154_v36, %v1156_v37  ;;  %v295_v41 = vsel %vm282_vm1, %v1156_v37, 0.0 }
 0x245   :  { %299 = vadd.xlane.f32.xlu2 %v298_v40  ;;  %296 = vadd.xlane.f32.xlu1 %v295_v41 }
 0x246   :  { %1092 = vmatmul.msk.bf16.vlgmr.msra.gmra.mxu3 %vm282_vm1, %v301_v38 }
 0x25d   :  { %552 = vrot.lane.b32.xlu2 %v1452_v33, %s1372_s23  ;;  %v242_v33 = vld [vmem:[#allocation10 + $0x38] sm:$0xff] }
 0x25e   :  { %554 = vrot.lane.b32.xlu1 %v1444_v26, %s1372_s23  ;;  %414 = vmatpush.msra.mxu2 %v242_v33  ;;  %v241_v26 = vld [vmem:[#allocation10 + $0x30] sm:$0xff] }
 0x260   :  { %415 = vmatpush.msra.mxu2 %v241_v26 }
 0x262   :  { %416 = vmatpush.msra.mxu2 %v240_v46 }
 0x264   :  { %417 = vmatpush.msra.mxu2 %v239_v49 }
 0x265   :  { %595 = vrot.lane.b32.xlu2 %v1460_v39, %s1372_s23  ;;  %v246_v39 = vld [vmem:[#allocation10 + $0x58] sm:$0xff] }
 0x266   :  { %539 = vmatpush.msrb.mxu2 %v246_v39 }
 0x268   :  { %540 = vmatpush.msrb.mxu2 %v1516_v50 }
 0x26a   :  { %541 = vmatpush.msrb.mxu2 %v1519_v51 }
 0x26c   :  { %542 = vmatpush.msrb.mxu2 %v1522_v52 }
 0x26d   :  { %735 = vrot.lane.b32.xlu2 %v1506_v48, %s1371_s4 }
 0x275   :  { %733 = vrot.lane.b32.xlu2 %v1480_v59, %s1371_s4 }
 0x27d   :  { %958 = vrot.lane.b32.xlu2 %v1506_v48, %s1372_s23 }
 0x285   :  { %858 = vrot.lane.b32.xlu2 %v1480_v59, %s1370_s2 }
 0x298   :  { %v367_v53 = vpop.xlane.xlu2 %366 }
 0x299   :  { %1157 = vrcp.f32 %v367_v53 }
 0x29f   :  { %v1158_v61 = vpop.eup %1157 }
 0x2a0   :  { %v370_v54 = vpop.xlane.xlu2 %369 }
 0x2a1   :  { %1159 = vrcp.f32 %v370_v54 }
 0x2a7   :  { %v1160_v2 = vpop.eup %1159 }
 0x2a8   :  { %v492_v57 = vpop.xlane.xlu2 %491 }
 0x2a9   :  { %1161 = vrcp.f32 %v492_v57 }
 0x2ab   :  { %v387_v62 = vpop.f32.mrf.mxu1 }
 0x2ac   :  { %v394_v63 = vmul.f32 %v1158_v61, %v387_v62 }
 0x2ae   :  { %1095 = vmatmul.msk.f32.vlgmr.msra.gmra.mxu2 %vm119_vm0, %v394_v63 }
 0x2af   :  { %680 = vmatpush.bf16.xpose.msra.mxu2 %v671_v0  ;;  %v1162_v6 = vpop.eup %1161 }
 0x2b0   :  { %v495_v1 = vpop.xlane.xlu2 %494 }
 0x2b1   :  { %1163 = vrcp.f32 %v495_v1 }
 0x2b3   :  { %v389_v3 = vpop.f32.mrf.mxu1 }
 0x2b4   :  { %v395_v4 = vmul.f32 %v1160_v2, %v389_v3 }
 0x2b6   :  { %1096 = vmatmul.msk.f32.gmra.mxu2 %vm119_vm0, %v395_v4 }
 0x2b7   :  { %v1164_v11 = vpop.eup %1163 }
 0x2b8   :  { %v300_v5 = vpop.xlane.xlu2 %299  ;;  %v297_v9 = vpop.xlane.xlu1 %296 }
 0x2b9   :  { %1165 = vrcp.f32 %v297_v9 }
 0x2ba   :  { %1167 = vrcp.f32 %v300_v5 }
 0x2bb   :  { %v512_v7 = vpop.f32.mrf.mxu1 }
 0x2bc   :  { %v519_v8 = vmul.f32 %v1162_v6, %v512_v7 }
 0x2be   :  { %1101 = vmatmul.msk.f32.vlgmr.msrb.gmra.mxu2 %vm119_vm0, %v519_v8 }
 0x2bf   :  { %818 = vmatpush.msrb.mxu2 %v242_v33  ;;  %v1166_v16 = vpop.eup %1165 }
 0x2c0   :  { %v553_v10 = vpop.permute.xlu2 %552  ;;  %v1168_v22 = vpop.eup %1167 }
 0x2c1   :  { %819 = vmatpush.msrb.mxu2 %v241_v26 }
 0x2c3   :  { %v514_v12 = vpop.f32.mrf.mxu1  ;;  %820 = vmatpush.msrb.mxu2 %v240_v46 }
 0x2c4   :  { %v520_v13 = vmul.f32 %v1164_v11, %v514_v12  ;;  %v1584_v12 = vld [vmem:[#allocation10 + $0x78] sm:$0xff] }
 0x2c5   :  { %821 = vmatpush.msrb.mxu2 %v239_v49  ;;  %637 = vmatpush.msrb.mxu1 %v1584_v12 }
 0x2c6   :  { %1102 = vmatmul.msk.f32.gmra.mxu2 %vm119_vm0, %v520_v13  ;;  %v1587_v13 = vld [vmem:[#allocation10 + $0x70] sm:$0xff] }
 0x2c7   :  { %638 = vmatpush.msrb.mxu1 %v1587_v13 }
 0x2c8   :  { %v596_v14 = vpop.permute.xlu2 %595 }
 0x2c9   :  { %v320_v17 = vpop.f32.mrf.mxu3  ;;  %608 = vmatpush.bf16.msrb.mxu0 %v596_v14  ;;  %v1593_v14 = vld [vmem:[#allocation10 + $0x60] sm:$0xff] }
 0x2ca   :  { %v327_v18 = vmul.f32 %v1166_v16, %v320_v17 }
 0x2cc   :  { %1097 = vmatmul.msk.f32.vlgmr.msrb.gmra.mxu3 %vm119_vm0, %v327_v18 }
 0x2ce   :  { %1107 = vmatmul.msk.bf16.vlgmr.msra.gmra.mxu2 %vm119_vm0, %v1480_v59 }
 0x2cf   :  { %943 = vmatpush.msra.mxu2 %v246_v39 }
 0x2d0   :  { %v555_v20 = vpop.permute.xlu1 %554  ;;  %v736_v21 = vpop.permute.xlu2 %735 }
 0x2d1   :  { %v560_v23 = vsel %vm119_vm0, %v555_v20, 0  ;;  %v741_v24 = vsel %vm119_vm0, %v736_v21, 0  ;;  %v322_v25 = vpop.f32.mrf.mxu3  ;;  %944 = vmatpush.msra.mxu2 %v1516_v50 }
 0x2d2   :  { %v328_v28 = vmul.f32 %v1168_v22, %v322_v25  ;;  %569 = vmatpush.bf16.xpose.msra.mxu3 %v560_v23  ;;  %750 = vmatpush.bf16.xpose.msra.mxu0 %v741_v24 }
 0x2d3   :  { %945 = vmatpush.msra.mxu2 %v1519_v51 }
 0x2d4   :  { %1098 = vmatmul.msk.f32.gmra.mxu3 %vm119_vm0, %v328_v28 }
 0x2d5   :  { %946 = vmatpush.msra.mxu2 %v1522_v52 }
 0x2da   :  { %722 = vmatpush.bf16.msrb.mxu3 %v1552_v32 }
 0x2dc   :  { %1103 = vmatmul.msk.bf16.vlgmr.msra.gmra.mxu3 %vm119_vm0, %v553_v10 }
 0x2de   :  { %847 = vmatpush.msra.mxu3 %v1525_v55  ;;  %v734_v55 = vpop.permute.xlu2 %733 }
 0x2e0   :  { %848 = vmatpush.msra.mxu3 %v1528_v56 }
 0x2e2   :  { %849 = vmatpush.msra.mxu3 %v1531_v58 }
 0x2e4   :  { %850 = vmatpush.msra.mxu3 %v1534_v60 }
 0x2e6   :  { %v959_v0 = vpop.permute.xlu2 %958 }
 0x2e7   :  { %v964_v2 = vsel %vm119_vm0, %v959_v0, 0 }
 0x2ee   :  { %v859_v16 = vpop.permute.xlu2 %858 }
 0x331   :  { %v419_v34 = vpop.f32.mrf.mxu2 }
 0x339   :  { %v422_v35 = vpop.f32.mrf.mxu2 }
 0x341   :  { %v544_v36 = vpop.f32.mrf.mxu2 }
 0x349   :  { %v547_v37 = vpop.f32.mrf.mxu2 }
 0x34f   :  { %v448_v38 = vpop.f32.mrf.mxu3 }
 0x350   :  { %v449_v40 = vadd.f32 %v448_v38, %v419_v34 }
 0x351   :  { %v682_v41 = vpop.f32.mrf.mxu2 }
 0x352   :  { %v687_v42 = vsel %vm282_vm1, %v682_v41, -inf  ;;  %v1561_v43 = vadd.f32 %v544_v36, %v449_v40 }
 0x353   :  { %688 = vmax.xlane.f32.xlu0 %v687_v42 }
 0x357   :  { %v451_v44 = vpop.f32.mrf.mxu3 }
 0x358   :  { %v452_v45 = vadd.f32 %v451_v44, %v422_v35 }
 0x359   :  { %v684_v47 = vpop.f32.mrf.mxu2 }
 0x35a   :  { %v690_v33 = vsel %vm282_vm1, %v684_v47, -inf  ;;  %v1564_v26 = vadd.f32 %v547_v37, %v452_v45 }
 0x35b   :  { %691 = vmax.xlane.f32.xlu0 %v690_v33 }
 0x35f   :  { %v571_v46 = vpop.f32.mrf.mxu3 }
 0x360   :  { %v576_v49 = vsel %vm282_vm1, %v571_v46, -inf }
 0x363   :  { %577 = vmax.xlane.f32.xlu0 %v576_v49 }
 0x367   :  { %v573_v39 = vpop.f32.mrf.mxu3 }
 0x368   :  { %v579_v50 = vsel %vm282_vm1, %v573_v39, -inf }
 0x369   :  { %580 = vmax.xlane.f32.xlu1 %v579_v50 }
 0x382   :  { %956 = vrot.lane.b32.xlu1 %v1480_v59, %s1372_s23 }
 0x3c6   :  { %v689_v51 = vpop.xlane.xlu0 %688 }
 0x3c7   :  { %v693_v52 = vsub.f32 %v682_v41, %v689_v51 }
 0x3c9   :  { %v695_v53 = vmul.f32 1.442695, %v693_v52 }
 0x3cb   :  { %1169 = vpow2.f32 %v695_v53 }
 0x3ce   :  { %v692_v54 = vpop.xlane.xlu0 %691 }
 0x3cf   :  { %v694_v56 = vsub.f32 %v684_v47, %v692_v54 }
 0x3d1   :  { %v1170_v57 = vpop.eup %1169  ;;  %v697_v58 = vmul.f32 1.442695, %v694_v56 }
 0x3d2   :  { %v699_v60 = vsel %vm282_vm1, %v1170_v57, 0.0 }
 0x3d3   :  { %1171 = vpow2.f32 %v697_v58  ;;  %700 = vadd.xlane.f32.xlu0 %v699_v60 }
 0x3d6   :  { %v578_v61 = vpop.xlane.xlu0 %577 }
 0x3d7   :  { %v582_v62 = vsub.f32 %v571_v46, %v578_v61 }
 0x3d9   :  { %v1172_v63 = vpop.eup %1171  ;;  %v584_v3 = vmul.f32 1.442695, %v582_v62 }
 0x3da   :  { %v705_v1 = vpack.c.bf16 %v1172_v63, %v1170_v57  ;;  %v702_v59 = vsel %vm282_vm1, %v1172_v63, 0.0 }
 0x3db   :  { %703 = vadd.xlane.f32.xlu0 %v702_v59  ;;  %1173 = vpow2.f32 %v584_v3 }
 0x3dc   :  { %v581_v4 = vpop.xlane.xlu1 %580  ;;  %1108 = vmatmul.msk.bf16.vlgmr.msrb.gmra.mxu3 %vm282_vm1, %v705_v1 }
 0x3dd   :  { %v583_v5 = vsub.f32 %v573_v39, %v581_v4  ;;  %973 = vmatpush.bf16.xpose.msrb.mxu3 %v964_v2  ;;  %v1625_v2 = vld [vmem:[%s1658_s5] ss:$0 sm:$0xff]  ;;  %s1373_s5 = smov [#allocation11]  }
 0x3de   :  { %s1062_s26 = sshll.u32 %s1373_s5, 4  ;;  %s1063_s26 = int_to_ptr.vmem [resolvable:$true] %s1062_s26 }
 0x3df   :  { %v586_v6 = vmul.f32 1.442695, %v583_v5 }
 0x3e1   :  { %1175 = vpow2.f32 %v586_v6  ;;  %v1174_v7 = vpop.eup %1173 }
 0x3e2   :  { %v588_v11 = vsel %vm282_vm1, %v1174_v7, 0.0 }
 0x3e7   :  { %v1176_v8 = vpop.eup %1175 }
 0x3e8   :  { %v594_v9 = vpack.c.bf16 %v1176_v8, %v1174_v7  ;;  %v591_v10 = vsel %vm282_vm1, %v1176_v8, 0.0 }
 0x3e9   :  { %592 = vadd.xlane.f32.xlu2 %v591_v10 }
 0x3ea   :  { %1104 = vmatmul.msk.bf16.vlgmr.msrb.gmra.mxu0 %vm282_vm1, %v594_v9 }
 0x3ef   :  { %860 = vrot.lane.b32.xlu0 %v1506_v48, %s1370_s2  ;;  %v1590_v48 = vld [vmem:[#allocation10 + $0x68] sm:$0xff] }
 0x3f0   :  { %639 = vmatpush.msrb.mxu1 %v1590_v48 }
 0x3f2   :  { %640 = vmatpush.msrb.mxu1 %v1593_v14 }
 0x3f4   :  { %v957_v31 = vpop.permute.xlu1 %956 }
 0x3fa   :  { %1109 = vmatmul.msk.bf16.vlgmr.msra.gmra.mxu0 %vm119_vm0, %v734_v55 }
 0x401   :  { %776 = vrot.lane.b32.xlu2 %v1552_v32, %s1371_s4 }
 0x409   :  { %901 = vrot.lane.b32.xlu2 %v1552_v32, %s1370_s2 }
 0x419   :  { %589 = vadd.xlane.f32.xlu0 %v588_v11 }
 0x446   :  { %v701_v15 = vpop.xlane.xlu0 %700 }
 0x447   :  { %1177 = vrcp.f32 %v701_v15 }
 0x44d   :  { %v1178_v19 = vpop.eup %1177 }
 0x44e   :  { %v704_v17 = vpop.xlane.xlu0 %703 }
 0x44f   :  { %1179 = vrcp.f32 %v704_v17 }
 0x455   :  { %v1180_v25 = vpop.eup %1179 }
 0x45c   :  { %v593_v18 = vpop.xlane.xlu2 %592 }
 0x45f   :  { %v724_v20 = vpop.f32.mrf.mxu3 }
 0x460   :  { %v731_v21 = vmul.f32 %v1178_v19, %v724_v20 }
 0x461   :  { %v861_v22 = vpop.permute.xlu0 %860 }
 0x462   :  { %v866_v23 = vsel %vm119_vm0, %v861_v22, 0  ;;  %1113 = vmatmul.msk.f32.vlgmr.msra.gmra.mxu3 %vm119_vm0, %v731_v21 }
 0x463   :  { %875 = vmatpush.bf16.xpose.msrb.mxu0 %v866_v23 }
 0x464   :  { %v777_v24 = vpop.permute.xlu2 %776 }
 0x465   :  { %789 = vmatpush.bf16.msra.mxu1 %v777_v24 }
 0x467   :  { %v610_v27 = vpop.f32.mrf.mxu0  ;;  %v726_v28 = vpop.f32.mrf.mxu3 }
 0x468   :  { %v732_v29 = vmul.f32 %v1180_v25, %v726_v28 }
 0x46a   :  { %1114 = vmatmul.msk.f32.gmra.mxu3 %vm119_vm0, %v732_v29  ;;  %1115 = vmatmul.msk.bf16.vlgmr.msrb.gmra.mxu0 %vm119_vm0, %v859_v16 }
 0x46c   :  { %v902_v42 = vpop.permute.xlu2 %901 }
 0x46f   :  { %v612_v30 = vpop.f32.mrf.mxu0 }
 0x472   :  { %1119 = vmatmul.msk.bf16.vlgmr.msrb.gmra.mxu3 %vm119_vm0, %v957_v31 }
 0x477   :  { %v752_v34 = vpop.f32.mrf.mxu0 }
 0x478   :  { %v757_v35 = vsel %vm282_vm1, %v752_v34, -inf }
 0x479   :  { %758 = vmax.xlane.f32.xlu1 %v757_v35 }
 0x47f   :  { %v754_v36 = vpop.f32.mrf.mxu0 }
 0x480   :  { %v760_v37 = vsel %vm282_vm1, %v754_v36, -inf }
 0x481   :  { %761 = vmax.xlane.f32.xlu0 %v760_v37 }
 0x48c   :  { %v590_v38 = vpop.xlane.xlu0 %589 }
 0x48d   :  { %1181 = vrcp.f32 %v590_v38 }
 0x48e   :  { %1183 = vrcp.f32 %v593_v18 }
 0x493   :  { %v1182_v40 = vpop.eup %1181 }
 0x494   :  { %v617_v41 = vmul.f32 %v1182_v40, %v610_v27  ;;  %v1184_v44 = vpop.eup %1183 }
 0x495   :  { %v618_v45 = vmul.f32 %v1184_v44, %v612_v30 }
 0x496   :  { %1105 = vmatmul.msk.f32.vlgmr.msrb.gmra.mxu1 %vm119_vm0, %v617_v41 }
 0x497   :  { %914 = vmatpush.bf16.msrb.mxu1 %v902_v42 }
 0x49e   :  { %1106 = vmatmul.msk.f32.gmra.mxu1 %vm119_vm0, %v618_v45 }
 0x4e5   :  { %v1605_v47 = vpop.f32.mrf.mxu3 }
 0x4e7   :  { %v877_v33 = vpop.f32.mrf.mxu0 }
 0x4e8   :  { %v882_v46 = vsel %vm282_vm1, %v877_v33, -inf }
 0x4e9   :  { %883 = vmax.xlane.f32.xlu0 %v882_v46 }
 0x4ec   :  { %v759_v49 = vpop.xlane.xlu1 %758 }
 0x4ed   :  { %v1608_v39 = vpop.f32.mrf.mxu3  ;;  %v763_v51 = vsub.f32 %v752_v34, %v759_v49 }
 0x4ef   :  { %v879_v50 = vpop.f32.mrf.mxu0  ;;  %v765_v53 = vmul.f32 1.442695, %v763_v51 }
 0x4f0   :  { %v885_v52 = vsel %vm282_vm1, %v879_v50, -inf }
 0x4f1   :  { %886 = vmax.xlane.f32.xlu0 %v885_v52  ;;  %1185 = vpow2.f32 %v765_v53 }
 0x4f4   :  { %v762_v54 = vpop.xlane.xlu0 %761 }
 0x4f5   :  { %v764_v55 = vsub.f32 %v754_v36, %v762_v54  ;;  %v975_v56 = vpop.f32.mrf.mxu3 }
 0x4f6   :  { %v980_v58 = vsel %vm282_vm1, %v975_v56, -inf }
 0x4f7   :  { %v767_v57 = vmul.f32 1.442695, %v764_v55  ;;  %v1186_v61 = vpop.eup %1185 }
 0x4f8   :  { %v769_v59 = vsel %vm282_vm1, %v1186_v61, 0.0 }
 0x4f9   :  { %1187 = vpow2.f32 %v767_v57  ;;  %981 = vmax.xlane.f32.xlu0 %v980_v58 }
 0x4fd   :  { %v977_v60 = vpop.f32.mrf.mxu3 }
 0x4fe   :  { %v983_v62 = vsel %vm282_vm1, %v977_v60, -inf }
 0x4ff   :  { %v1188_v63 = vpop.eup %1187  ;;  %984 = vmax.xlane.f32.xlu1 %v983_v62 }
 0x500   :  { %v775_v0 = vpack.c.bf16 %v1188_v63, %v1186_v61  ;;  %v772_v1 = vsel %vm282_vm1, %v1188_v63, 0.0 }
 0x501   :  { %773 = vadd.xlane.f32.xlu2 %v772_v1 }
 0x502   :  { %1110 = vmatmul.msk.bf16.vlgmr.msra.gmra.mxu1 %vm282_vm1, %v775_v0 }
 0x503   :  { %1041 = vmatpush.msra.mxu1 %v1584_v12 }
 0x505   :  { %1042 = vmatpush.msra.mxu1 %v1587_v13 }
 0x507   :  { %770 = vadd.xlane.f32.xlu1 %v769_v59  ;;  %1043 = vmatpush.msra.mxu1 %v1590_v48 }
 0x509   :  { %1044 = vmatpush.msra.mxu1 %v1593_v14 }
 0x50d   :  { %999 = vrot.lane.b32.xlu0 %v1552_v32, %s1372_s23 }
 0x513   :  { %v642_v3 = vpop.f32.mrf.mxu1 }
 0x514   :  { %v648_v4 = vadd.f32 %v642_v3, %v1561_v43 }
 0x516   :  { %v653_v5 = vadd.f32 %v1625_v2, %v648_v4 }
 0x518   :  { %655 = vst [vmem:[#allocation11] sm:$0xff] %v653_v5 }
 0x51b   :  { %v645_v6 = vpop.f32.mrf.mxu1 }
 0x51c   :  { %v649_v7 = vadd.f32 %v645_v6, %v1564_v26 }
 0x51e   :  { %v654_v8 = vadd.f32 %v1625_v2, %v649_v7 }
 0x520   :  { %656 = vst [vmem:[#allocation11 + $0x8] sm:$0xff] %v654_v8 }
 0x55c   :  { %v884_v9 = vpop.xlane.xlu0 %883 }
 0x55d   :  { %v888_v10 = vsub.f32 %v877_v33, %v884_v9 }
 0x55f   :  { %v890_v32 = vmul.f32 1.442695, %v888_v10 }
 0x561   :  { %1189 = vpow2.f32 %v890_v32 }
 0x564   :  { %v887_v11 = vpop.xlane.xlu0 %886 }
 0x565   :  { %v889_v12 = vsub.f32 %v879_v50, %v887_v11 }
 0x567   :  { %v1190_v13 = vpop.eup %1189  ;;  %v892_v48 = vmul.f32 1.442695, %v889_v12 }
 0x568   :  { %v894_v14 = vsel %vm282_vm1, %v1190_v13, 0.0 }
 0x569   :  { %1191 = vpow2.f32 %v892_v48  ;;  %895 = vadd.xlane.f32.xlu1 %v894_v14 }
 0x56c   :  { %v982_v43 = vpop.xlane.xlu0 %981 }
 0x56d   :  { %v986_v15 = vsub.f32 %v975_v56, %v982_v43 }
 0x56f   :  { %v1192_v16 = vpop.eup %1191  ;;  %v988_v17 = vmul.f32 1.442695, %v986_v15 }
 0x570   :  { %v900_v26 = vpack.c.bf16 %v1192_v16, %v1190_v13  ;;  %v897_v18 = vsel %vm282_vm1, %v1192_v16, 0.0 }
 0x571   :  { %1193 = vpow2.f32 %v988_v17  ;;  %898 = vadd.xlane.f32.xlu1 %v897_v18 }
 0x572   :  { %v985_v19 = vpop.xlane.xlu1 %984  ;;  %1116 = vmatmul.msk.bf16.vlgmr.msrb.gmra.mxu1 %vm282_vm1, %v900_v26 }
 0x573   :  { %v987_v20 = vsub.f32 %v977_v60, %v985_v19 }
 0x574   :  { %v774_v30 = vpop.xlane.xlu2 %773 }
 0x575   :  { %v990_v21 = vmul.f32 1.442695, %v987_v20 }
 0x577   :  { %v1194_v22 = vpop.eup %1193  ;;  %1195 = vpow2.f32 %v990_v21 }
 0x578   :  { %v992_v23 = vsel %vm282_vm1, %v1194_v22, 0.0 }
 0x579   :  { %993 = vadd.xlane.f32.xlu0 %v992_v23 }
 0x57a   :  { %v771_v24 = vpop.xlane.xlu1 %770 }
 0x57b   :  { %1197 = vrcp.f32 %v771_v24 }
 0x57c   :  { %1199 = vrcp.f32 %v774_v30 }
 0x57d   :  { %v1196_v25 = vpop.eup %1195 }
 0x57e   :  { %v995_v27 = vsel %vm282_vm1, %v1196_v25, 0.0  ;;  %v998_v34 = vpack.c.bf16 %v1196_v25, %v1194_v22 }
 0x57f   :  { %v791_v28 = vpop.f32.mrf.mxu1  ;;  %996 = vadd.xlane.f32.xlu1 %v995_v27  ;;  %v1000_v29 = vpop.permute.xlu0 %999 }
 0x580   :  { %1012 = vmatpush.bf16.msra.mxu0 %v1000_v29 }
 0x581   :  { %v1198_v31 = vpop.eup %1197 }
 0x582   :  { %v798_v35 = vmul.f32 %v1198_v31, %v791_v28  ;;  %v1200_v37 = vpop.eup %1199 }
 0x583   :  { %1120 = vmatmul.msk.bf16.vlgmr.msra.gmra.mxu0 %vm282_vm1, %v998_v34 }
 0x584   :  { %1111 = vmatmul.msk.f32.vlgmr.msrb.gmra.mxu2 %vm119_vm0, %v798_v35 }
 0x587   :  { %v793_v36 = vpop.f32.mrf.mxu1 }
 0x588   :  { %v799_v38 = vmul.f32 %v1200_v37, %v793_v36 }
 0x58c   :  { %1112 = vmatmul.msk.f32.gmra.mxu2 %vm119_vm0, %v799_v38 }
 0x5dc   :  { %v896_v40 = vpop.xlane.xlu1 %895 }
 0x5dd   :  { %1201 = vrcp.f32 %v896_v40 }
 0x5e3   :  { %v1202_v42 = vpop.eup %1201 }
 0x5e4   :  { %v899_v41 = vpop.xlane.xlu1 %898 }
 0x5e5   :  { %1203 = vrcp.f32 %v899_v41 }
 0x5eb   :  { %v1204_v33 = vpop.eup %1203 }
 0x5ec   :  { %v994_v46 = vpop.xlane.xlu0 %993 }
 0x5ed   :  { %1205 = vrcp.f32 %v994_v46 }
 0x5ef   :  { %v916_v44 = vpop.f32.mrf.mxu1 }
 0x5f0   :  { %v923_v45 = vmul.f32 %v1202_v42, %v916_v44 }
 0x5f2   :  { %1117 = vmatmul.msk.f32.vlgmr.msra.gmra.mxu2 %vm119_vm0, %v923_v45  ;;  %v997_v51 = vpop.xlane.xlu1 %996 }
 0x5f3   :  { %v1206_v52 = vpop.eup %1205  ;;  %1207 = vrcp.f32 %v997_v51 }
 0x5f7   :  { %v918_v49 = vpop.f32.mrf.mxu1 }
 0x5f8   :  { %v924_v50 = vmul.f32 %v1204_v33, %v918_v49 }
 0x5f9   :  { %v1208_v55 = vpop.eup %1207 }
 0x5fa   :  { %1118 = vmatmul.msk.f32.gmra.mxu2 %vm119_vm0, %v924_v50 }
 0x600   :  { %v1014_v53 = vpop.f32.mrf.mxu0 }
 0x601   :  { %v1021_v54 = vmul.f32 %v1206_v52, %v1014_v53 }
 0x603   :  { %1121 = vmatmul.msk.f32.vlgmr.msra.gmra.mxu1 %vm119_vm0, %v1021_v54 }
 0x607   :  { %v823_v58 = vpop.f32.mrf.mxu2 }
 0x608   :  { %v1016_v56 = vpop.f32.mrf.mxu0  ;;  %v853_v62 = vadd.f32 %v1605_v47, %v823_v58 }
 0x609   :  { %v1022_v57 = vmul.f32 %v1208_v55, %v1016_v56 }
 0x60b   :  { %1122 = vmatmul.msk.f32.gmra.mxu1 %vm119_vm0, %v1022_v57 }
 0x60f   :  { %v826_v60 = vpop.f32.mrf.mxu2 }
 0x610   :  { %v856_v4 = vadd.f32 %v1608_v39, %v826_v60 }
 0x675   :  { %v948_v61 = vpop.f32.mrf.mxu2 }
 0x676   :  { %v954_v63 = vadd.f32 %v948_v61, %v853_v62 }
 0x67d   :  { %v951_v3 = vpop.f32.mrf.mxu2 }
 0x67e   :  { %v955_v5 = vadd.f32 %v951_v3, %v856_v4 }
 0x680   :  { %v1046_v0 = vpop.f32.mrf.mxu1 }
 0x681   :  { %v1052_v1 = vadd.f32 %v1046_v0, %v954_v63 }
 0x683   :  { %v1054_v59 = vadd.f32 %v1625_v2, %v1052_v1 }
 0x685   :  { %1056 = vst [vmem:[#allocation11 + $0x10] sm:$0xff] %v1054_v59 }
 0x688   :  { %v1049_v6 = vpop.f32.mrf.mxu1 }
 0x689   :  { %v1053_v7 = vadd.f32 %v1049_v6, %v955_v5 }
 0x68b   :  { %v1055_v47 = vadd.f32 %v1625_v2, %v1053_v7 }
 0x68d   :  { %1057 = vst [vmem:[#allocation11 + $0x18] sm:$0xff] %v1055_v47 }
 0x68e   :  { %1070 = dma.vmem_to_hbm [thread:$0]  %s1063_s26, 512, %s1065_s7, [#allocation4], %s1362_s29, %s1362_s29, %s1363_s30  }
 0x68f   :  { %1359 = dma.done.wait [#allocation4], 512  }
 0x690   :  { %1360 = vsyncadd [#allocation4], 4294966784 }
 0x691   :  { %1075 = vsyncpa [#allocation3], 1 }
 0x692   :  { %1076 = vsyncpa [#allocation6], 1 }
 0x693   :  { %1077 = vsyncpa [#allocation9], 1 }
 0x694   :  { %1078 = vsyncpa [#allocation4], 1 }

</bundles_post_ra>
